<compile_context>
chip_gen: v7x
topology: tpu7x:2x2x1
jax: 0.10.0
libtpu: 0.0.40
codegen_flags: <defaults>
</compile_context>

<pallas_src>
import functools
import re

import jax
import jax.numpy as jnp
from jax.experimental import pallas as pl
from jax.experimental.pallas import tpu as pltpu

LN_EPS = 1e-5  # nn.LayerNorm default
LANE = 128


def _round_up(x, m):
    return ((x + m - 1) // m) * m


def _tpu_generation():
    try:
        kind = jax.devices()[0].device_kind  # e.g. "TPU v5 lite", "TPU v6e"
        m = re.search(r"v(\d+)", kind)
        if m:
            return int(m.group(1))
    except Exception:
        pass
    return 6


def _vmem_capacity_bytes():
    try:
        return int(pltpu.get_tpu_info().vmem_capacity_bytes)
    except Exception:
        # v7x has 64 MiB / TC, v5e/v6e have 128 MiB.
        return (64 << 20) if _tpu_generation() >= 7 else (128 << 20)


def down_block_kernel(img_ref, embd_ref, ln_gb_ref, b_blk_ref, w_blk_ref,
                      b_comb_ref, w_comb_ref, out_ref, *,
                      input_dim, bf16_elementwise):
    # ---- LayerNorm, single-pass stats in f32 ----
    # Padded input lanes are zero (wrapper pad) and padded gamma/beta are zero,
    # so padded lanes of xn are exactly zero without any mask/select.
    x = img_ref[...].astype(jnp.float32)
    inv_n = jnp.float32(1.0 / input_dim)
    mean = jnp.sum(x, axis=-1, keepdims=True) * inv_n
    var = jnp.sum(x * x, axis=-1, keepdims=True) * inv_n - mean * mean
    gamma = ln_gb_ref[0:1, :]
    beta = ln_gb_ref[1:2, :]
    scale = gamma * jax.lax.rsqrt(var + LN_EPS)          # fold gamma into rsqrt
    xn = (x - mean) * scale + beta

    # ---- fused imgFC/embdFC: one block-diagonal matmul on the MXU ----
    xe = jnp.concatenate([xn, embd_ref[...].astype(jnp.float32)], axis=-1)
    h = jnp.dot(xe.astype(jnp.bfloat16), w_blk_ref[...],
                preferred_element_type=jnp.float32)       # [B, 2*emb_p] f32 acc
    if bf16_elementwise:
        # v6e/v7x: bf16 VPU/EUP exist -> SiLU in bf16, halves vreg pressure.
        h = jax.nn.silu((h + b_blk_ref[...]).astype(jnp.bfloat16))
    else:
        # v5e: keep elementwise math in f32, cast only for the MXU.
        h = jax.nn.silu(h + b_blk_ref[...]).astype(jnp.bfloat16)

    # ---- fused (imgOut + embdOut) ∘ outFC: single composed matmul ----
    o = jnp.dot(h, w_comb_ref[...], preferred_element_type=jnp.float32)
    o = jax.nn.silu(o + b_comb_ref[...])
    out_ref[...] = o.astype(out_ref.dtype)


def down_block_pallas(img, embd, params, *, max_block_b=None):
    """img: [B, input_dim], embd: [B, embedding_dim] -> [B, output_dim]."""
    B, input_dim = img.shape
    embedding_dim = embd.shape[1]
    output_dim = params["w_outfc"].shape[1]

    gen = _tpu_generation()
    f32, bf16 = jnp.float32, jnp.bfloat16

    # Pad every feature dim to the 128-lane boundary (lane-dense vregs,
    # unmasked vst on the output; MXU pads internally anyway).
    in_p = _round_up(input_dim, LANE)
    emb_p = _round_up(embedding_dim, LANE)
    out_p = _round_up(output_dim, LANE)

    # Batch tiling: round to 16 sublanes (packed bf16 vregs). For large B split
    # into an even number of grid steps so v7x megacore can shard the batch axis.
    if max_block_b is None:
        max_block_b = 512 if gen >= 7 else 1024
    b16 = _round_up(B, 16)
    if b16 <= max_block_b:
        block_b, n_tiles = b16, 1
    else:
        n_tiles = _round_up(pl.cdiv(b16, max_block_b), 2)
        block_b = _round_up(pl.cdiv(b16, n_tiles), 16)
    B_pad = block_b * n_tiles

    def pad2(a, r, c):
        a = jnp.asarray(a, f32)
        return jnp.pad(a, ((0, r - a.shape[0]), (0, c - a.shape[1])))

    img_p = jnp.pad(img, ((0, B_pad - B), (0, in_p - input_dim)))
    embd_p = jnp.pad(embd, ((0, B_pad - B), (0, emb_p - embedding_dim)))

    # LayerNorm gamma/beta packed into one (2, in_p) operand (fewer DMAs).
    ln_gb = jnp.concatenate([pad2(params["ln_g"], 1, in_p),
                             pad2(params["ln_b"], 1, in_p)], axis=0)

    # Fusion 1: block-diagonal imgFC/embdFC weight [in_p+emb_p, 2*emb_p].
    w_img = pad2(params["w_imgfc"], in_p, emb_p)
    w_emb = pad2(params["w_embdfc"], emb_p, emb_p)
    w_blk = jnp.concatenate(
        [jnp.concatenate([w_img, jnp.zeros((in_p, emb_p), f32)], axis=1),
         jnp.concatenate([jnp.zeros((emb_p, emb_p), f32), w_emb], axis=1)],
        axis=0).astype(bf16)
    b_blk = jnp.concatenate([pad2(params["b_imgfc"], 1, emb_p),
                             pad2(params["b_embdfc"], 1, emb_p)], axis=1)

    # Fusion 2: compose (imgOut+embdOut) with outFC in f32, then cast to bf16.
    w_merge = jnp.concatenate([pad2(params["w_imgout"], emb_p, out_p),
                               pad2(params["w_embdout"], emb_p, out_p)], axis=0)
    w_out = pad2(params["w_outfc"], out_p, out_p)
    w_comb = (w_merge @ w_out).astype(bf16)                       # [2*emb_p, out_p]
    b_merge = pad2(params["b_imgout"] + params["b_embdout"], 1, out_p)
    b_comb = b_merge @ w_out + pad2(params["b_outfc"], 1, out_p)  # (1, out_p) f32

    # ---- VMEM accounting (bias tiles sublane-pad to 8 rows) ----
    weight_bytes = w_blk.size * 2 + w_comb.size * 2               # bf16
    vec_bytes = (8 * in_p + 8 * 2 * emb_p + 8 * out_p) * 4        # f32, sublane-padded
    act_bytes = block_b * (in_p + emb_p) * 4
    out_bytes = block_b * out_p * 4

    # Grid-invariant weights: single pipeline buffer once they are big enough
    # for double-buffering to matter (safe no-op path for tiny configs).
    try:
        pl.BlockSpec((1, LANE), lambda i: (0, 0), pipeline_mode=pl.Buffered(1))
        buffered_ok = True
    except Exception:
        buffered_ok = False
    single_buffer_weights = buffered_ok and (weight_bytes + vec_bytes > (4 << 20))

    if single_buffer_weights:
        def const_spec(shape):
            return pl.BlockSpec(shape, lambda i: (0, 0), pipeline_mode=pl.Buffered(1))
    else:
        def const_spec(shape):
            return pl.BlockSpec(shape, lambda i: (0, 0))

    w_factor = 1 if single_buffer_weights else 2
    vmem_needed = (2 * (act_bytes + out_bytes)
                   + w_factor * (weight_bytes + vec_bytes) + (8 << 20))
    vmem_limit = int(min(vmem_needed, 0.75 * _vmem_capacity_bytes()))
    # TODO(synk): if the fused weights ever exceed ~75% of per-core VMEM,
    # K-tile the two matmuls (extra grid axis + pl.when accumulator) instead
    # of full weight residency.

    in_specs = [
        pl.BlockSpec((block_b, in_p), lambda i: (i, 0)),     # img
        pl.BlockSpec((block_b, emb_p), lambda i: (i, 0)),    # embd
        const_spec((2, in_p)),                               # [gamma; beta]
        const_spec((1, 2 * emb_p)),                          # fused imgFC/embdFC bias
        const_spec((in_p + emb_p, 2 * emb_p)),               # block-diag W
        const_spec((1, out_p)),                              # composed bias
        const_spec((2 * emb_p, out_p)),                      # composed W
    ]
    out_spec = pl.BlockSpec((block_b, out_p), lambda i: (i, 0))

    out = pl.pallas_call(
        functools.partial(down_block_kernel, input_dim=input_dim,
                          bf16_elementwise=(gen >= 6)),
        out_shape=jax.ShapeDtypeStruct((B_pad, out_p), img.dtype),
        grid_spec=pl.GridSpec(
            grid=(n_tiles,),
            in_specs=in_specs,
            out_specs=out_spec,
        ),
        compiler_params=pltpu.CompilerParams(
            dimension_semantics=("parallel",),
            vmem_limit_bytes=vmem_limit,
        ),
    )(img_p, embd_p, ln_gb, b_blk, w_blk, b_comb, w_comb)

    return out[:B, :output_dim]


def down_block_ref(img, embd, p):
    """Pure-JAX f32 reference mirroring the PyTorch forward."""
    x = img.astype(jnp.float32)
    mean = jnp.mean(x, axis=-1, keepdims=True)
    var = jnp.mean((x - mean) ** 2, axis=-1, keepdims=True)
    x = (x - mean) / jnp.sqrt(var + LN_EPS) * p["ln_g"] + p["ln_b"]
    h_img = jax.nn.silu(x @ p["w_imgfc"] + p["b_imgfc"])
    h_emb = jax.nn.silu(embd.astype(jnp.float32) @ p["w_embdfc"] + p["b_embdfc"])
    out = (h_img @ p["w_imgout"] + p["b_imgout"]) + (h_emb @ p["w_embdout"] + p["b_embdout"])
    return jax.nn.silu(out @ p["w_outfc"] + p["b_outfc"])


def make_params(key, input_dim, embedding_dim, output_dim, dtype=jnp.float32):
    """Deterministic synthetic params; Linear weights stored as [in, out]."""
    keys = jax.random.split(key, 10)

    def lin(kw, kb, fan_in, fan_out):
        bound = 1.0 / jnp.sqrt(fan_in)
        w = jax.random.uniform(kw, (fan_in, fan_out), dtype, -bound, bound)
        b = jax.random.uniform(kb, (1, fan_out), dtype, -bound, bound)
        return w, b

    w1, b1 = lin(keys[0], keys[1], input_dim, embedding_dim)       # imgFC
    w2, b2 = lin(keys[2], keys[3], embedding_dim, embedding_dim)   # embdFC
    w3, b3 = lin(keys[4], keys[5], embedding_dim, output_dim)      # imgOut
    w4, b4 = lin(keys[6], keys[7], embedding_dim, output_dim)      # embdOut
    w5, b5 = lin(keys[8], keys[9], output_dim, output_dim)         # outFC

    return dict(
        ln_g=jnp.ones((1, input_dim), dtype),
        ln_b=jnp.zeros((1, input_dim), dtype),
        w_imgfc=w1, b_imgfc=b1,
        w_embdfc=w2, b_embdfc=b2,
        w_imgout=w3, b_imgout=b3,
        w_embdout=w4, b_embdout=b4,
        w_outfc=w5, b_outfc=b5,
    )


if __name__ == "__main__":
    B, INPUT_DIM, EMBEDDING_DIM, OUTPUT_DIM = 16, 32, 48, 64

    key = jax.random.PRNGKey(0)
    k_img, k_embd, k_params = jax.random.split(key, 3)

    img = jax.random.normal(k_img, (B, INPUT_DIM), jnp.float32)
    embd = jax.random.normal(k_embd, (B, EMBEDDING_DIM), jnp.float32)
    params = make_params(k_params, INPUT_DIM, EMBEDDING_DIM, OUTPUT_DIM)

    out = down_block_pallas(img, embd, params)
    out = jax.block_until_ready(out)

    ref = down_block_ref(img, embd, params)
    assert out.shape == (B, OUTPUT_DIM), out.shape
    # bf16 MXU operands (including the composed merge∘outFC weight) with f32
    # accumulation -> looser tolerance vs the pure-f32 reference.
    assert jnp.allclose(out, ref, atol=3e-2, rtol=3e-2), float(
        jnp.max(jnp.abs(out - ref)))

    print("KERNEL_OK")
</pallas_src>

<mosaic_0001>
module attributes {stable_mosaic.version = 11 : i64} {
  func.func @down_block_kernel(%arg0: i32, %arg1: memref<16x128xf32, #tpu.memory_space<vmem>>, %arg2: memref<16x128xf32, #tpu.memory_space<vmem>>, %arg3: memref<2x128xf32, #tpu.memory_space<vmem>>, %arg4: memref<1x256xf32, #tpu.memory_space<vmem>>, %arg5: memref<256x256xbf16, #tpu.memory_space<vmem>>, %arg6: memref<1x128xf32, #tpu.memory_space<vmem>>, %arg7: memref<256x128xbf16, #tpu.memory_space<vmem>>, %arg8: memref<16x128xf32, #tpu.memory_space<vmem>>) attributes {dimension_semantics = [#tpu.dimension_semantics<parallel>], iteration_bounds = array<i64: 1>, scalar_prefetch = 0 : i64, scratch_operands = 0 : i64, tpu.core_type = #tpu.core_type<tc>, window_params = [{transform_indices = @transform_0, window_bounds = array<i64: 16, 128>}, {transform_indices = @transform_1, window_bounds = array<i64: 16, 128>}, {pipeline_mode = #tpu.pipeline_mode<synchronous>, transform_indices = @transform_2, window_bounds = array<i64: 2, 128>}, {pipeline_mode = #tpu.pipeline_mode<synchronous>, transform_indices = @transform_3, window_bounds = array<i64: 1, 256>}, {pipeline_mode = #tpu.pipeline_mode<synchronous>, transform_indices = @transform_4, window_bounds = array<i64: 256, 256>}, {pipeline_mode = #tpu.pipeline_mode<synchronous>, transform_indices = @transform_5, window_bounds = array<i64: 1, 128>}, {pipeline_mode = #tpu.pipeline_mode<synchronous>, transform_indices = @transform_6, window_bounds = array<i64: 256, 128>}, {transform_indices = @transform_7, window_bounds = array<i64: 16, 128>}]} {
    %c0 = arith.constant 0 : index
    %c0_0 = arith.constant 0 : index
    %0 = vector.load %arg1[%c0, %c0_0] : memref<16x128xf32, #tpu.memory_space<vmem>>, vector<16x128xf32>
    %cst = arith.constant dense<0.000000e+00> : vector<16xf32>
    %1 = vector.multi_reduction <add>, %0, %cst [1] : vector<16x128xf32> to vector<16xf32>
    %2 = vector.shape_cast %1 : vector<16xf32> to vector<16x1xf32>
    %cst_1 = arith.constant 3.125000e-02 : f32
    %3 = vector.broadcast %cst_1 : f32 to vector<16x1xf32>
    %4 = arith.mulf %2, %3 : vector<16x1xf32>
    %5 = arith.mulf %0, %0 : vector<16x128xf32>
    %cst_2 = arith.constant dense<0.000000e+00> : vector<16xf32>
    %6 = vector.multi_reduction <add>, %5, %cst_2 [1] : vector<16x128xf32> to vector<16xf32>
    %7 = vector.shape_cast %6 : vector<16xf32> to vector<16x1xf32>
    %cst_3 = arith.constant 3.125000e-02 : f32
    %8 = vector.broadcast %cst_3 : f32 to vector<16x1xf32>
    %9 = arith.mulf %7, %8 : vector<16x1xf32>
    %10 = arith.mulf %4, %4 : vector<16x1xf32>
    %11 = arith.subf %9, %10 : vector<16x1xf32>
    %c0_4 = arith.constant 0 : index
    %c0_5 = arith.constant 0 : index
    %12 = vector.load %arg3[%c0_4, %c0_5] : memref<2x128xf32, #tpu.memory_space<vmem>>, vector<1x128xf32>
    %c1 = arith.constant 1 : index
    %c0_6 = arith.constant 0 : index
    %13 = vector.load %arg3[%c1, %c0_6] : memref<2x128xf32, #tpu.memory_space<vmem>>, vector<1x128xf32>
    %cst_7 = arith.constant 9.99999974E-6 : f32
    %14 = vector.broadcast %cst_7 : f32 to vector<16x1xf32>
    %15 = arith.addf %11, %14 : vector<16x1xf32>
    %16 = math.rsqrt %15 : vector<16x1xf32>
    %17 = vector.broadcast %12 : vector<1x128xf32> to vector<16x128xf32>
    %18 = vector.broadcast %16 : vector<16x1xf32> to vector<16x128xf32>
    %19 = arith.mulf %17, %18 : vector<16x128xf32>
    %20 = vector.broadcast %4 : vector<16x1xf32> to vector<16x128xf32>
    %21 = arith.subf %0, %20 : vector<16x128xf32>
    %22 = arith.mulf %21, %19 : vector<16x128xf32>
    %23 = vector.broadcast %13 : vector<1x128xf32> to vector<16x128xf32>
    %24 = arith.addf %22, %23 : vector<16x128xf32>
    %c0_8 = arith.constant 0 : index
    %c0_9 = arith.constant 0 : index
    %25 = vector.load %arg2[%c0_8, %c0_9] : memref<16x128xf32, #tpu.memory_space<vmem>>, vector<16x128xf32>
    %26 = tpu.concatenate %24, %25 in 1 : vector<16x128xf32>, vector<16x128xf32> -> vector<16x256xf32>
    %27 = arith.truncf %26 : vector<16x256xf32> to vector<16x256xbf16>
    %c0_10 = arith.constant 0 : index
    %c0_11 = arith.constant 0 : index
    %28 = vector.load %arg5[%c0_10, %c0_11] : memref<256x256xbf16, #tpu.memory_space<vmem>>, vector<256x256xbf16>
    %cst_12 = arith.constant dense<0.000000e+00> : vector<16x256xf32>
    %29 = tpu.matmul %27, %28, %cst_12 {dimension_numbers = #tpu.dot_dimension_numbers<[1], [0], [0], [1], [0, 0, 1, 1], [], []>} : vector<16x256xbf16>, vector<256x256xbf16>, vector<16x256xf32> -> vector<16x256xf32>
    %c0_13 = arith.constant 0 : index
    %c0_14 = arith.constant 0 : index
    %30 = vector.load %arg4[%c0_13, %c0_14] : memref<1x256xf32, #tpu.memory_space<vmem>>, vector<1x256xf32>
    %31 = vector.broadcast %30 : vector<1x256xf32> to vector<16x256xf32>
    %32 = arith.addf %29, %31 : vector<16x256xf32>
    %33 = arith.truncf %32 : vector<16x256xf32> to vector<16x256xbf16>
    %34 = arith.negf %33 : vector<16x256xbf16>
    %35 = math.exp %34 : vector<16x256xbf16>
    %cst_15 = arith.constant 1.000000e+00 : bf16
    %36 = vector.broadcast %cst_15 : bf16 to vector<16x256xbf16>
    %37 = arith.addf %36, %35 : vector<16x256xbf16>
    %38 = arith.divf %36, %37 : vector<16x256xbf16>
    %39 = arith.mulf %33, %38 : vector<16x256xbf16>
    %c0_16 = arith.constant 0 : index
    %c0_17 = arith.constant 0 : index
    %40 = vector.load %arg7[%c0_16, %c0_17] : memref<256x128xbf16, #tpu.memory_space<vmem>>, vector<256x128xbf16>
    %cst_18 = arith.constant dense<0.000000e+00> : vector<16x128xf32>
    %41 = tpu.matmul %39, %40, %cst_18 {dimension_numbers = #tpu.dot_dimension_numbers<[1], [0], [0], [1], [0, 0, 1, 1], [], []>} : vector<16x256xbf16>, vector<256x128xbf16>, vector<16x128xf32> -> vector<16x128xf32>
    %c0_19 = arith.constant 0 : index
    %c0_20 = arith.constant 0 : index
    %42 = vector.load %arg6[%c0_19, %c0_20] : memref<1x128xf32, #tpu.memory_space<vmem>>, vector<1x128xf32>
    %43 = vector.broadcast %42 : vector<1x128xf32> to vector<16x128xf32>
    %44 = arith.addf %41, %43 : vector<16x128xf32>
    %45 = arith.negf %44 : vector<16x128xf32>
    %46 = math.exp %45 : vector<16x128xf32>
    %cst_21 = arith.constant 1.000000e+00 : f32
    %47 = vector.broadcast %cst_21 : f32 to vector<16x128xf32>
    %48 = arith.addf %47, %46 : vector<16x128xf32>
    %49 = arith.divf %47, %48 : vector<16x128xf32>
    %50 = arith.mulf %44, %49 : vector<16x128xf32>
    %c0_22 = arith.constant 0 : index
    %c0_23 = arith.constant 0 : index
    %51 = vector.load %arg8[%c0_22, %c0_23] : memref<16x128xf32, #tpu.memory_space<vmem>>, vector<16x128xf32>
    tpu.vector_store %arg8[%c0_22, %c0_23], %50 {strides = array<i32>} : memref<16x128xf32, #tpu.memory_space<vmem>>, vector<16x128xf32>,
    return
  }
  func.func @transform_0(%arg0: i32) -> (i32, i32) {
    %c0_i32 = arith.constant 0 : i32
    %c0_i32_0 = arith.constant 0 : i32
    return %arg0, %c0_i32 : i32, i32
  }
  func.func @transform_1(%arg0: i32) -> (i32, i32) {
    %c0_i32 = arith.constant 0 : i32
    %c0_i32_0 = arith.constant 0 : i32
    return %arg0, %c0_i32 : i32, i32
  }
  func.func @transform_2(%arg0: i32) -> (i32, i32) {
    %c0_i32 = arith.constant 0 : i32
    %c0_i32_0 = arith.constant 0 : i32
    %c0_i32_1 = arith.constant 0 : i32
    return %c0_i32, %c0_i32_0 : i32, i32
  }
  func.func @transform_3(%arg0: i32) -> (i32, i32) {
    %c0_i32 = arith.constant 0 : i32
    %c0_i32_0 = arith.constant 0 : i32
    %c0_i32_1 = arith.constant 0 : i32
    return %c0_i32, %c0_i32_0 : i32, i32
  }
  func.func @transform_4(%arg0: i32) -> (i32, i32) {
    %c0_i32 = arith.constant 0 : i32
    %c0_i32_0 = arith.constant 0 : i32
    %c0_i32_1 = arith.constant 0 : i32
    return %c0_i32, %c0_i32_0 : i32, i32
  }
  func.func @transform_5(%arg0: i32) -> (i32, i32) {
    %c0_i32 = arith.constant 0 : i32
    %c0_i32_0 = arith.constant 0 : i32
    %c0_i32_1 = arith.constant 0 : i32
    return %c0_i32, %c0_i32_0 : i32, i32
  }
  func.func @transform_6(%arg0: i32) -> (i32, i32) {
    %c0_i32 = arith.constant 0 : i32
    %c0_i32_0 = arith.constant 0 : i32
    %c0_i32_1 = arith.constant 0 : i32
    return %c0_i32, %c0_i32_0 : i32, i32
  }
  func.func @transform_7(%arg0: i32) -> (i32, i32) {
    %c0_i32 = arith.constant 0 : i32
    %c0_i32_0 = arith.constant 0 : i32
    return %arg0, %c0_i32 : i32, i32
  }
}

</mosaic_0001>

<bundles_post_ra>
// kernel: tpu_custom_call.1
= control target key start
LH: loop header
LB: loop body
LE: loop exit
PB: predicated region body
PF: predicated region fallthrough
CT: control target
= control target key end

     0   :  { %12 = vsyncpa [#allocation3], 0  ;;  %s1053_s0 = inlined_call_operand.hbm [shape: f32[16,128], index: 0, kind: input, shape index: {}]   ;;  %s1054_s1 = inlined_call_operand.hbm [shape: f32[16,128], index: 1, kind: input, shape index: {}]   ;;  %s1055_s2 = inlined_call_operand.vmem [shape: f32[2,128], index: 2, kind: input, shape index: {}]   ;;  %s1056_s3 = inlined_call_operand.vmem [shape: f32[1,256], index: 3, kind: input, shape index: {}]   ;;  %s1057_s4 = inlined_call_operand.hbm [shape: bf16[256,256], index: 4, kind: input, shape index: {}]   ;;  %s1058_s5 = inlined_call_operand.vmem [shape: f32[1,128], index: 5, kind: input, shape index: {}]   ;;  %s1059_s6 = inlined_call_operand.hbm [shape: bf16[256,128], index: 6, kind: input, shape index: {}]   ;;  %s1060_s7 = inlined_call_operand.hbm [shape: f32[16,128], index: 7, kind: output, shape index: {}]  }
   0x1   :  { %13 = vsyncpa [#allocation6], 0 }
   0x2   :  { %14 = vsyncpa [#allocation9], 0 }
   0x3   :  { %15 = vsyncpa [#allocation4], 0  ;;  %s894_s24 = smov [#allocation5]   ;;  %s895_s26 = smov [#allocation2]  }
   0x4   :  { %s33_s25 = sshll.u32 %s894_s24, 4  ;;  %s21_s27 = sshll.u32 %s895_s26, 4  ;;  %s34_s25 = int_to_ptr.vmem [resolvable:$true] %s33_s25  ;;  %s943_s27 = int_to_ptr.vmem [resolvable:$true] %s21_s27 }
   0x5   :  { %s776_s30 = scalar_lea.hbm %s1054_s1, 256 }
   0x6   :  { %p777_p0 = scmp.ne.s32.totalorder %s1054_s1, %s776_s30  ;;  %p780_p1 = scmp.lt.u32.totalorder %s776_s30, %s1054_s1 }
   0x8   :  { %p782_p2 = pnand %p780_p1, %p777_p0 }
   0xa   :  { %785 = shalt.err (!%p782_p2)
}
   0xb   :  { %s786_s12 = scalar_lea.vmem %s34_s25, 256  ;;  %p791_p4 = scmp.lt.s32.totalorder %s34_s25, %s34_s25 }
   0xc   :  { %p787_p3 = scmp.ne.s32.totalorder %s34_s25, %s786_s12  ;;  %p792_p5 = scmp.lt.s32.totalorder %s786_s12, %s786_s12 }
   0xe   :  { %p793_p6 = por %p792_p5, %p791_p4 }
  0x10   :  { %p794_p7 = pnand %p793_p6, %p787_p3 }
  0x12   :  { %797 = shalt.err (!%p794_p7)
}
  0x13   :  { %s896_s13 = smov 128   ;;  %s897_s14 = smov 8  }
  0x14   :  { %39 = dma.hbm_to_vmem [thread:$0]  %s1054_s1, 256, %s34_s25, [#allocation6], %s896_s13, %s896_s13, %s897_s14  }
  0x15   :  { %s798_s19 = scalar_lea.hbm %s1053_s0, 256 }
  0x16   :  { %p799_p8 = scmp.ne.s32.totalorder %s1053_s0, %s798_s19  ;;  %p802_p9 = scmp.lt.u32.totalorder %s798_s19, %s1053_s0 }
  0x18   :  { %p804_p10 = pnand %p802_p9, %p799_p8 }
  0x1a   :  { %807 = shalt.err (!%p804_p10)
}
  0x1b   :  { %s808_s24 = scalar_lea.vmem %s943_s27, 256  ;;  %p813_p12 = scmp.lt.s32.totalorder %s943_s27, %s943_s27 }
  0x1c   :  { %p809_p11 = scmp.ne.s32.totalorder %s943_s27, %s808_s24  ;;  %p814_p13 = scmp.lt.s32.totalorder %s808_s24, %s808_s24 }
  0x1e   :  { %p815_p0 = por %p814_p13, %p813_p12 }
  0x20   :  { %p816_p1 = pnand %p815_p0, %p809_p11 }
  0x22   :  { %819 = shalt.err (!%p816_p1)
}
  0x23   :  { %27 = dma.hbm_to_vmem [thread:$0]  %s1053_s0, 256, %s943_s27, [#allocation3], %s896_s13, %s896_s13, %s897_s14  }
  0x24   :  { %s898_s26 = smov [#allocation7]   ;;  %s899_s29 = smov [#allocation8]  }
  0x25   :  { %s49_s28 = sshll.u32 %s898_s26, 4  ;;  %s63_s30 = sshll.u32 %s899_s29, 4  ;;  %s50_s28 = int_to_ptr.vmem [resolvable:$true] %s49_s28  ;;  %s980_s30 = int_to_ptr.vmem [resolvable:$true] %s63_s30 }
  0x26   :  { %s820_s10 = scalar_lea.hbm %s1057_s4, 4096 }
  0x27   :  { %p821_p2 = scmp.ne.s32.totalorder %s1057_s4, %s820_s10  ;;  %p824_p3 = scmp.lt.u32.totalorder %s820_s10, %s1057_s4 }
  0x29   :  { %p826_p4 = pnand %p824_p3, %p821_p2 }
  0x2b   :  { %829 = shalt.err (!%p826_p4)
}
  0x2c   :  { %s830_s0 = scalar_lea.vmem %s50_s28, 4096  ;;  %p835_p6 = scmp.lt.s32.totalorder %s50_s28, %s50_s28 }
  0x2d   :  { %p831_p5 = scmp.ne.s32.totalorder %s50_s28, %s830_s0  ;;  %p836_p7 = scmp.lt.s32.totalorder %s830_s0, %s830_s0 }
  0x2f   :  { %p837_p8 = por %p836_p7, %p835_p6 }
  0x31   :  { %p838_p9 = pnand %p837_p8, %p831_p5 }
  0x33   :  { %841 = shalt.err (!%p838_p9)
}
  0x34   :  { %55 = dma.hbm_to_vmem [thread:$0]  %s1057_s4, 4096, %s50_s28, [#allocation6], %s896_s13, %s896_s13, %s897_s14  }
  0x35   :  { %s842_s20 = scalar_lea.hbm %s1059_s6, 2048 }
  0x36   :  { %p843_p10 = scmp.ne.s32.totalorder %s1059_s6, %s842_s20  ;;  %p846_p11 = scmp.lt.u32.totalorder %s842_s20, %s1059_s6 }
  0x38   :  { %p848_p12 = pnand %p846_p11, %p843_p10 }
  0x3a   :  { %851 = shalt.err (!%p848_p12)
}
  0x3b   :  { %s852_s1 = scalar_lea.vmem %s980_s30, 2048  ;;  %p857_p0 = scmp.lt.s32.totalorder %s980_s30, %s980_s30 }
  0x3c   :  { %p853_p13 = scmp.ne.s32.totalorder %s980_s30, %s852_s1  ;;  %p858_p1 = scmp.lt.s32.totalorder %s852_s1, %s852_s1 }
  0x3e   :  { %p859_p2 = por %p858_p1, %p857_p0 }
  0x40   :  { %p860_p3 = pnand %p859_p2, %p853_p13 }
  0x42   :  { %863 = shalt.err (!%p860_p3)
}
  0x43   :  { %s900_s4 = smov 64   ;;  %s901_s25 = smov 4  }
  0x44   :  { %69 = dma.hbm_to_vmem [thread:$0]  %s1059_s6, 2048, %s980_s30, [#allocation9], %s900_s4, %s900_s4, %s901_s25  }
  0x45   :  { %886 = dma.done.wait [#allocation3], 256  }
  0x46   :  { %887 = vsyncadd [#allocation3], 4294967040 }
  0x47   :  { %888 = dma.done.wait [#allocation6], 4352  }
  0x48   :  { %889 = vsyncadd [#allocation6], 4294962944 }
  0x49   :  { %890 = dma.done.wait [#allocation9], 2048  }
  0x4a   :  { %891 = vsyncadd [#allocation9], 4294965248  ;;  %v1014_v0 = vld [vmem:[#allocation2] sm:$0xff]  ;;  %v1016_v1 = vld [vmem:[#allocation2 + $0x8] sm:$0xff]  ;;  %s902_s11 = smov [#allocation10]  }
  0x4b   :  { %86 = vadd.xlane.f32.xlu0 %v1014_v0  ;;  %v92_v2 = vmul.f32 %v1014_v0, %v1014_v0  ;;  %v692_v3 = vld [vmem:[#allocation7 + $0x4] ss:$8 sps:$4 sm:$0xff]   ;;  %v694_v4 = vld [vmem:[#allocation7] ss:$8 sps:$4 sm:$0xff]   ;;  %v695_v5 = vld [vmem:[#allocation7 + $0x14] ss:$8 sps:$4 sm:$0xff]   ;;  %v93_v6 = vmul.f32 %v1016_v1, %v1016_v1 }
  0x4c   :  { %334 = vmatprep.subr.bf16.mxu0 %v692_v3  ;;  %v697_v7 = vld [vmem:[#allocation7 + $0x10] ss:$8 sps:$4 sm:$0xff]   ;;  %v698_v8 = vld [vmem:[#allocation7 + $0x24] ss:$8 sps:$4 sm:$0xff]   ;;  %v700_v9 = vld [vmem:[#allocation7 + $0x20] ss:$8 sps:$4 sm:$0xff]  }
  0x4d   :  { %94 = vadd.xlane.f32.xlu1 %v92_v2  ;;  %335 = vmatpush1.bf16.msra.mxu0 %v694_v4  ;;  %v701_v10 = vld [vmem:[#allocation7 + $0x34] ss:$8 sps:$4 sm:$0xff]   ;;  %v703_v11 = vld [vmem:[#allocation7 + $0x30] ss:$8 sps:$4 sm:$0xff]   ;;  %v704_v12 = vld [vmem:[#allocation7 + $0x44] ss:$8 sps:$4 sm:$0xff]  }
  0x4e   :  { %336 = vmatprep.subr.bf16.mxu0 %v695_v5  ;;  %v706_v13 = vld [vmem:[#allocation7 + $0x40] ss:$8 sps:$4 sm:$0xff]   ;;  %v707_v14 = vld [vmem:[#allocation7 + $0x54] ss:$8 sps:$4 sm:$0xff]   ;;  %v709_v15 = vld [vmem:[#allocation7 + $0x50] ss:$8 sps:$4 sm:$0xff]  }
  0x4f   :  { %88 = vadd.xlane.f32.xlu0 %v1016_v1  ;;  %v710_v16 = vld [vmem:[#allocation7 + $0x64] ss:$8 sps:$4 sm:$0xff]   ;;  %v712_v17 = vld [vmem:[#allocation7 + $0x60] ss:$8 sps:$4 sm:$0xff]   ;;  %v713_v18 = vld [vmem:[#allocation7 + $0x74] ss:$8 sps:$4 sm:$0xff]  }
  0x50   :  { %v715_v19 = vld [vmem:[#allocation7 + $0x70] ss:$8 sps:$4 sm:$0xff]   ;;  %v716_v20 = vld [vmem:[#allocation7 + $0x84] ss:$8 sps:$4 sm:$0xff]   ;;  %v718_v22 = vld [vmem:[#allocation7 + $0x80] ss:$8 sps:$4 sm:$0xff]  }
  0x51   :  { %96 = vadd.xlane.f32.xlu1 %v93_v6  ;;  %337 = vmatpush1.bf16.msra.mxu0 %v697_v7  ;;  %v126_v21 = vld [vmem:[#allocation5] sm:$0xff]  ;;  %v127_v23 = vld [vmem:[#allocation5 + $0x8] sm:$0xff]  ;;  %v722_v27 = vld [vmem:[#allocation7 + $0xa4] ss:$8 sps:$4 sm:$0xff]  }
  0x52   :  { %338 = vmatprep.subr.bf16.mxu0 %v698_v8  ;;  %v719_v24 = vld [vmem:[#allocation7 + $0x94] ss:$8 sps:$4 sm:$0xff]   ;;  %v129_v25 = vpack.c.bf16 %v127_v23, %v126_v21  ;;  %v721_v26 = vld [vmem:[#allocation7 + $0x90] ss:$8 sps:$4 sm:$0xff]   ;;  %v724_v28 = vld [vmem:[#allocation7 + $0xa0] ss:$8 sps:$4 sm:$0xff]  }
  0x53   :  { %v725_v29 = vld [vmem:[#allocation7 + $0xb4] ss:$8 sps:$4 sm:$0xff]   ;;  %v727_v30 = vld [vmem:[#allocation7 + $0xb0] ss:$8 sps:$4 sm:$0xff]   ;;  %v728_v31 = vld [vmem:[#allocation7 + $0xc4] ss:$8 sps:$4 sm:$0xff]  }
  0x54   :  { %366 = vmatprep.mubr.bf16.mxu0 %v129_v25  ;;  %v730_v32 = vld [vmem:[#allocation7 + $0xc0] ss:$8 sps:$4 sm:$0xff]   ;;  %v731_v33 = vld [vmem:[#allocation7 + $0xd4] ss:$8 sps:$4 sm:$0xff]   ;;  %v733_v34 = vld [vmem:[#allocation7 + $0xd0] ss:$8 sps:$4 sm:$0xff]  }
  0x55   :  { %339 = vmatpush1.bf16.msra.mxu0 %v700_v9  ;;  %v734_v35 = vld [vmem:[#allocation7 + $0xe4] ss:$8 sps:$4 sm:$0xff]   ;;  %v736_v36 = vld [vmem:[#allocation7 + $0xe0] ss:$8 sps:$4 sm:$0xff]   ;;  %v737_v37 = vld [vmem:[#allocation7 + $0xf4] ss:$8 sps:$4 sm:$0xff]  }
  0x56   :  { %340 = vmatprep.subr.bf16.mxu0 %v701_v10  ;;  %v739_v38 = vld [vmem:[#allocation7 + $0xf0] ss:$8 sps:$4 sm:$0xff]   ;;  %v606_v53 = vld [vmem:[%s1055_s2] ss:$0 sm:$0xff]  ;;  %v607_v61 = vld [vmem:[%s1055_s2 + $0x1] ss:$0 sm:$0xff] }
  0x57   :  { %v740_v4 = vld [vmem:[#allocation8 + $0x40] sm:$0xff]   ;;  %v742_v6 = vld [vmem:[#allocation8 + $0x48] sm:$0xff]   ;;  %v745_v7 = vld [vmem:[#allocation8 + $0x10] sm:$0xff]  }
  0x58   :  { %v741_v5 = vld [vmem:[#allocation8] sm:$0xff]   ;;  %661 = vmatprep.subr.bf16.mxu1 %v740_v4  ;;  %v746_v8 = vld [vmem:[#allocation8 + $0x58] sm:$0xff]  }
  0x59   :  { %341 = vmatpush1.bf16.msra.mxu0 %v703_v11  ;;  %662 = vmatpush3.bf16.msra.mxu1 %v741_v5  ;;  %v747_v9 = vld [vmem:[#allocation8 + $0x18] sm:$0xff]   ;;  %v748_v10 = vld [vmem:[#allocation8 + $0x60] sm:$0xff]  }
  0x5a   :  { %342 = vmatprep.subr.bf16.mxu0 %v704_v12  ;;  %663 = vmatprep.subr.bf16.mxu1 %v742_v6  ;;  %v749_v11 = vld [vmem:[#allocation8 + $0x20] sm:$0xff]   ;;  %v750_v12 = vld [vmem:[#allocation8 + $0x68] sm:$0xff]  }
  0x5b   :  { %v162_v21 = vld [vmem:[%s1056_s3] sm:$0x3] }
  0x5d   :  { %343 = vmatpush1.bf16.msra.mxu0 %v706_v13  ;;  %v751_v13 = vld [vmem:[#allocation8 + $0x28] sm:$0xff]  }
  0x5e   :  { %344 = vmatprep.subr.bf16.mxu0 %v707_v14  ;;  %v752_v14 = vld [vmem:[#allocation8 + $0x70] sm:$0xff]  }
  0x61   :  { %345 = vmatpush1.bf16.msra.mxu0 %v709_v15  ;;  %v753_v15 = vld [vmem:[#allocation8 + $0x30] sm:$0xff]  }
  0x62   :  { %346 = vmatprep.subr.bf16.mxu0 %v710_v16  ;;  %v754_v16 = vld [vmem:[#allocation8 + $0x78] sm:$0xff]  }
  0x65   :  { %347 = vmatpush1.bf16.msra.mxu0 %v712_v17  ;;  %v755_v17 = vld [vmem:[#allocation8 + $0x38] sm:$0xff]  }
  0x66   :  { %348 = vmatprep.subr.bf16.mxu0 %v713_v18  ;;  %v164_v18 = vlaneseq }
  0x69   :  { %349 = vmatpush1.bf16.msra.mxu0 %v715_v19  ;;  %v165_v19 = vshrl.u32 %v164_v18, 7 }
  0x6a   :  { %350 = vmatprep.subr.bf16.mxu0 %v716_v20 }
  0x6b   :  { %v166_v20 = vsub.s32 0, %v165_v19 }
  0x6d   :  { %351 = vmatpush1.bf16.msra.mxu0 %v718_v22  ;;  %v170_v22 = vsub.s32 1, %v165_v19  ;;  %v167_v23 = vrot.slane %v162_v21, %v166_v20 }
  0x6e   :  { %352 = vmatprep.subr.bf16.mxu0 %v719_v24 }
  0x6f   :  { %v171_v25 = vrot.slane %v162_v21, %v170_v22 }
  0x71   :  { %353 = vmatpush1.bf16.msra.mxu0 %v721_v26 }
  0x72   :  { %354 = vmatprep.subr.bf16.mxu0 %v722_v27 }
  0x75   :  { %355 = vmatpush1.bf16.msra.mxu0 %v724_v28 }
  0x76   :  { %356 = vmatprep.subr.bf16.mxu0 %v725_v29 }
  0x79   :  { %357 = vmatpush1.bf16.msra.mxu0 %v727_v30 }
  0x7a   :  { %358 = vmatprep.subr.bf16.mxu0 %v728_v31 }
  0x7d   :  { %359 = vmatpush1.bf16.msra.mxu0 %v730_v32 }
  0x7e   :  { %360 = vmatprep.subr.bf16.mxu0 %v731_v33 }
  0x81   :  { %361 = vmatpush1.bf16.msra.mxu0 %v733_v34 }
  0x82   :  { %362 = vmatprep.subr.bf16.mxu0 %v734_v35 }
  0x85   :  { %363 = vmatpush1.bf16.msra.mxu0 %v736_v36 }
  0x86   :  { %364 = vmatprep.subr.bf16.mxu0 %v737_v37 }
  0x89   :  { %365 = vmatpush1.bf16.msra.mxu0 %v739_v38 }
  0xd8   :  { %v87_v39 = vpop.xlane.xlu0 %86 }
  0xd9   :  { %v90_v40 = vmul.f32 0.03125, %v87_v39 }
  0xda   :  { %v95_v41 = vpop.xlane.xlu1 %94 }
  0xdb   :  { %v100_v42 = vmul.f32 %v90_v40, %v90_v40  ;;  %v98_v43 = vmul.f32 0.03125, %v95_v41  ;;  %v116_v56 = vsub.f32 %v1014_v0, %v90_v40  ;;  %v743_v0 = vld [vmem:[#allocation8 + $0x8] sm:$0xff]  }
  0xdc   :  { %v89_v44 = vpop.xlane.xlu0 %88  ;;  %664 = vmatpush3.bf16.msra.mxu1 %v743_v0 }
  0xdd   :  { %v102_v45 = vsub.f32 %v98_v43, %v100_v42  ;;  %v91_v46 = vmul.f32 0.03125, %v89_v44 }
  0xde   :  { %v97_v47 = vpop.xlane.xlu1 %96 }
  0xdf   :  { %v106_v48 = vadd.f32 1e-05, %v102_v45  ;;  %v101_v49 = vmul.f32 %v91_v46, %v91_v46  ;;  %v99_v50 = vmul.f32 0.03125, %v97_v47  ;;  %v117_v58 = vsub.f32 %v1016_v1, %v91_v46  ;;  %v744_v1 = vld [vmem:[#allocation8 + $0x50] sm:$0xff]  }
  0xe0   :  { %665 = vmatprep.subr.bf16.mxu1 %v744_v1 }
  0xe1   :  { %756 = vrsqrt.f32 %v106_v48  ;;  %v103_v51 = vsub.f32 %v99_v50, %v101_v49  ;;  %666 = vmatpush3.bf16.msra.mxu1 %v745_v7  ;;  %v642_v48 = vld [vmem:[%s1058_s5] ss:$0 sm:$0xff]  ;;  %s592_s5 = sshll.u32 %s902_s11, 4  ;;  %s593_s5 = int_to_ptr.vmem [resolvable:$true] %s592_s5 }
  0xe2   :  { %667 = vmatprep.subr.bf16.mxu1 %v746_v8  ;;  %s864_s12 = scalar_lea.vmem %s593_s5, 256  ;;  %p869_p5 = scmp.lt.s32.totalorder %s593_s5, %s593_s5 }
  0xe3   :  { %v107_v52 = vadd.f32 1e-05, %v103_v51  ;;  %p865_p4 = scmp.ne.s32.totalorder %s593_s5, %s864_s12  ;;  %p870_p6 = scmp.lt.s32.totalorder %s864_s12, %s864_s12 }
  0xe5   :  { %758 = vrsqrt.f32 %v107_v52  ;;  %668 = vmatpush3.bf16.msra.mxu1 %v747_v9  ;;  %p871_p7 = por %p870_p6, %p869_p5 }
  0xe6   :  { %669 = vmatprep.subr.bf16.mxu1 %v748_v10 }
  0xe7   :  { %p872_p8 = pnand %p871_p7, %p865_p4 }
  0xe9   :  { %670 = vmatpush3.bf16.msra.mxu1 %v749_v11 }
  0xea   :  { %671 = vmatprep.subr.bf16.mxu1 %v750_v12 }
  0xeb   :  { %v757_v54 = vpop.eup %756 }
  0xec   :  { %v114_v55 = vmul.f32 %v757_v54, %v606_v53 }
  0xed   :  { %672 = vmatpush3.bf16.msra.mxu1 %v751_v13 }
  0xee   :  { %v118_v60 = vmul.f32 %v116_v56, %v114_v55  ;;  %673 = vmatprep.subr.bf16.mxu1 %v752_v14 }
  0xef   :  { %v759_v57 = vpop.eup %758 }
  0xf0   :  { %v115_v59 = vmul.f32 %v759_v57, %v606_v53  ;;  %v124_v63 = vadd.f32 %v607_v61, %v118_v60 }
  0xf1   :  { %674 = vmatpush3.bf16.msra.mxu1 %v753_v15 }
  0xf2   :  { %v119_v62 = vmul.f32 %v117_v58, %v115_v59  ;;  %675 = vmatprep.subr.bf16.mxu1 %v754_v16 }
  0xf4   :  { %v125_v2 = vadd.f32 %v607_v61, %v119_v62 }
  0xf5   :  { %676 = vmatpush3.bf16.msra.mxu1 %v755_v17 }
  0xf6   :  { %v128_v3 = vpack.c.bf16 %v125_v2, %v124_v63 }
  0xf8   :  { %367 = vmatmul.mubr.bf16.vlgmr.msra.gmra.mrb[0].mxu0 %v128_v3 }
 0x1cb   :  { %v368_v24 = vpop.f32.mrb[0].mxu0 }
 0x1cc   :  { %v370_v26 = vpop.f32.mrb[1].mxu0  ;;  %v369_v28 = vadd.f32 %v368_v24, %v167_v23 }
 0x1cd   :  { %v372_v27 = vpop.f32.mrb[2].mxu0  ;;  %v371_v31 = vadd.f32 %v370_v26, %v171_v25 }
 0x1ce   :  { %v373_v29 = vadd.f32 %v372_v27, %v167_v23  ;;  %v374_v30 = vpop.f32.mrb[3].mxu0 }
 0x1cf   :  { %v375_v32 = vadd.f32 %v374_v30, %v171_v25 }
 0x1d0   :  { %v377_v33 = vpack.c.bf16 %v373_v29, %v369_v28 }
 0x1d1   :  { %v378_v34 = vpack.c.bf16 %v375_v32, %v371_v31 }
 0x1d2   :  { %v640_v35 = vmul.bf16 3216621497, %v377_v33 }
 0x1d3   :  { %v641_v36 = vmul.bf16 3216621497, %v378_v34 }
 0x1d4   :  { %760 = vpow.bf16 %v640_v35 }
 0x1d5   :  { %762 = vpow.bf16 %v641_v36 }
 0x1df   :  { %v761_v37 = vpop.eup %760 }
 0x1e0   :  { %v763_v38 = vpop.eup %762  ;;  %v387_v39 = vadd.bf16 1065369472, %v761_v37 }
 0x1e1   :  { %v388_v40 = vadd.bf16 1065369472, %v763_v38 }
 0x1e2   :  { %764 = vrcp.bf16 %v387_v39 }
 0x1e3   :  { %766 = vrcp.bf16 %v388_v40 }
 0x1ed   :  { %v765_v41 = vpop.eup %764 }
 0x1ee   :  { %v767_v42 = vpop.eup %766  ;;  %v390_v43 = vmul.bf16 1065369472, %v765_v41 }
 0x1ef   :  { %v392_v44 = vmul.bf16 1065369472, %v767_v42 }
 0x1f0   :  { %v393_v46 = vmul.bf16 %v390_v43, %v377_v33 }
 0x1f1   :  { %v394_v45 = vmul.bf16 %v392_v44, %v378_v34 }
 0x1f3   :  { %562 = vmatprep.mubr.bf16.mxu1 %v394_v45 }
 0x1f4   :  { %563 = vmatmul.mubr.bf16.vlgmr.msra.gmra.mrb[0].mxu1 %v393_v46 }
 0x2c7   :  { %v677_v47 = vpop.f32.mrb[0].mxu1 }
 0x2c8   :  { %v678_v49 = vpop.f32.mrb[1].mxu1 }
 0x2c9   :  { %v679_v50 = vadd.f32 %v678_v49, %v677_v47  ;;  %v680_v51 = vpop.f32.mrb[2].mxu1 }
 0x2ca   :  { %v681_v52 = vpop.f32.mrb[3].mxu1 }
 0x2cb   :  { %v565_v53 = vadd.f32 %v679_v50, %v642_v48  ;;  %v682_v54 = vadd.f32 %v681_v52, %v680_v51 }
 0x2cd   :  { %v659_v55 = vmul.f32 -1.442695, %v565_v53  ;;  %v568_v56 = vadd.f32 %v682_v54, %v642_v48 }
 0x2cf   :  { %768 = vpow2.f32 %v659_v55  ;;  %v660_v57 = vmul.f32 -1.442695, %v568_v56 }
 0x2d1   :  { %770 = vpow2.f32 %v660_v57 }
 0x2d9   :  { %v769_v58 = vpop.eup %768 }
 0x2da   :  { %v577_v59 = vadd.f32 1.0, %v769_v58 }
 0x2db   :  { %v771_v60 = vpop.eup %770 }
 0x2dc   :  { %772 = vrcp.f32 %v577_v59  ;;  %v578_v61 = vadd.f32 1.0, %v771_v60 }
 0x2de   :  { %774 = vrcp.f32 %v578_v61 }
 0x2e6   :  { %v773_v62 = vpop.eup %772 }
 0x2e7   :  { %v583_v63 = vmul.f32 %v773_v62, %v565_v53 }
 0x2e8   :  { %v775_v2 = vpop.eup %774 }
 0x2e9   :  { %585 = vst [vmem:[#allocation10] sm:$0xff] %v583_v63  ;;  %v584_v3 = vmul.f32 %v775_v2, %v568_v56 }
 0x2eb   :  { %586 = vst [vmem:[#allocation10 + $0x8] sm:$0xff] %v584_v3 }
 0x2ec   :  { %875 = shalt.err (!%p872_p8)
}
 0x2ed   :  { %s876_s0 = scalar_lea.hbm %s1060_s7, 256 }
 0x2ee   :  { %p877_p9 = scmp.ne.s32.totalorder %s1060_s7, %s876_s0  ;;  %p880_p10 = scmp.lt.u32.totalorder %s876_s0, %s1060_s7 }
 0x2f0   :  { %p882_p11 = pnand %p880_p10, %p877_p9 }
 0x2f2   :  { %885 = shalt.err (!%p882_p11)
}
 0x2f3   :  { %598 = dma.vmem_to_hbm [thread:$0]  %s593_s5, 256, %s1060_s7, [#allocation4], %s896_s13, %s896_s13, %s897_s14  }
 0x2f4   :  { %892 = dma.done.wait [#allocation4], 256  }
 0x2f5   :  { %893 = vsyncadd [#allocation4], 4294967040 }
 0x2f6   :  { %602 = vsyncpa [#allocation3], 1 }
 0x2f7   :  { %603 = vsyncpa [#allocation6], 1 }
 0x2f8   :  { %604 = vsyncpa [#allocation9], 1 }
 0x2f9   :  { %605 = vsyncpa [#allocation4], 1 }

</bundles_post_ra>
